<compile_context>
chip_gen: v5e
topology: v5e:2x2
jax: 0.10.0
libtpu: 0.0.40
codegen_flags: <defaults>
</compile_context>

<pallas_src>
import functools

import jax
import jax.numpy as jnp
from jax.experimental import pallas as pl
from jax.experimental.pallas import tpu as pltpu


# ----------------------------- Pallas kernel ------------------------------- #
def _bottleneck_kernel(x_ref, w1_ref, b1_ref, w2_ref, b2_ref, o_ref,
                       *, H, WC, add):
    """One (R, W*C) slab per grid step, lane-dense folded layout.

    x_ref  : (R, WC)     bf16 input rows, R = images_per_block * H, WC = W*C
    wX_ref : (3, WC, WC) bf16 per-H-tap block-Toeplitz conv weight (BN scale folded)
    bX_ref : (1, WC)     f32  folded BatchNorm bias, tiled over W
    o_ref  : (R, WC)     f32  output rows
    """
    R = x_ref.shape[0]
    x = x_ref[...]                                            # (R, WC) bf16
    row = jax.lax.broadcasted_iota(jnp.int32, (R, 1), 0)
    is_top = (row % H) == 0                                   # first row of each image
    is_bot = (row % H) == (H - 1)                             # last row of each image
    zrow = jnp.zeros((1, WC), x.dtype)

    def conv_bn_silu(src, w_ref, b_ref):
        # H-direction taps: rows h-1 / h / h+1, zero halo rows at every
        # per-image border (the row%H masks also kill cross-image bleed).
        prev = jnp.concatenate([zrow, src[:R - 1, :]], axis=0)
        prev = jnp.where(is_top, jnp.zeros_like(prev), prev)
        nxt = jnp.concatenate([src[1:, :], zrow], axis=0)
        nxt = jnp.where(is_bot, jnp.zeros_like(nxt), nxt)
        # Split-K: three accumulating bf16 MXU dots (f32 acc), no (R, 3*WC)
        # xcat copy.
        y = jnp.dot(prev, w_ref[0], preferred_element_type=jnp.float32)
        y += jnp.dot(src, w_ref[1], preferred_element_type=jnp.float32)
        y += jnp.dot(nxt, w_ref[2], preferred_element_type=jnp.float32)
        y = y + b_ref[...]                                    # folded BN bias (f32)
        sig = pl.reciprocal(1.0 + jnp.exp(-y), approx=True)   # exp + rcp on EUP
        return y * sig                                        # SiLU, f32

    y1 = conv_bn_silu(x, w1_ref, b1_ref)
    y2 = conv_bn_silu(y1.astype(x.dtype), w2_ref, b2_ref)
    if add:
        y2 = y2 + x.astype(jnp.float32)                       # residual shortcut
    o_ref[...] = y2


# ------------------------------- Wrapper ------------------------------------ #
def _fold_conv_bn(p, W, eps):
    """Build per-H-tap block-Toeplitz weights (BN scale folded) + tiled bias.

    p = (conv_w[OIHW], gamma, beta, running_mean, running_var)
    Returns:
      big_w : (3, W*Cin, W*Cout) bf16.  For a zero-H-padded input row
              r_{h+dy-1} folded as (W*Cin,), the 3x3 conv output row h
              (folded as (W*Cout,)) is  sum_dy  r_{h+dy-1} @ big_w[dy].
              W-direction zero padding is encoded by the Toeplitz structure.
      bias  : (1, W*Cout) f32
    """
    w, g, b, m, v = p
    c_out, c_in, kh, kw = w.shape
    assert kh == 3 and kw == 3, "only k=3 supported"
    scale = (g / jnp.sqrt(v + eps)).astype(jnp.float32)
    bias = (b - m * scale).astype(jnp.float32)

    w_hwio = jnp.transpose(w, (2, 3, 1, 0)).astype(jnp.float32)     # (3,3,Ci,Co)
    w_scaled = w_hwio * scale[None, None, None, :]                  # fold BN scale

    win = jnp.arange(W)[:, None]             # input column index
    wout = jnp.arange(W)[None, :]            # output column index
    dx = win - wout + 1                      # tap index for this (win, wout)
    valid = ((dx >= 0) & (dx <= 2)).astype(jnp.float32)
    dx_c = jnp.clip(dx, 0, 2)

    blocks = []
    for dy in range(3):
        blk = w_scaled[dy][dx_c] * valid[:, :, None, None]          # (W,W,Ci,Co)
        blk = jnp.transpose(blk, (0, 2, 1, 3)).reshape(W * c_in, W * c_out)
        blocks.append(blk)
    big_w = jnp.stack(blocks, axis=0).astype(jnp.bfloat16)          # (3,W*Ci,W*Co)
    bias_f = jnp.tile(bias, (W,)).reshape(1, W * c_out)
    return big_w, bias_f


def bottleneck_pallas(x_nchw, p1, p2, add=True, eps=1e-5, fuse_batch=None):
    """p1/p2 = (conv_w[OIHW], gamma, beta, running_mean, running_var)."""
    N, C, H, W = x_nchw.shape
    # Module is only shape-consistent when c1 == c_ == c2.
    assert p1[0].shape == (C, C, 3, 3) and p2[0].shape == (C, C, 3, 3), \
        "Bottleneck requires c1 == c_ == c2 for a consistent forward pass"
    assert H >= 2, "H must be >= 2"

    WC = W * C
    assert WC % 128 == 0, "demo requires lane-dense W*C (pad otherwise)"

    # NCHW -> NHWC -> fold (W, C) into the lane axis -> flatten batch rows:
    # (N*H, W*C), bf16 for the MXU (halves activation DMA bytes).
    x2d = (jnp.transpose(x_nchw, (0, 2, 3, 1))
           .reshape(N * H, WC)
           .astype(jnp.bfloat16))

    w1, b1 = _fold_conv_bn(p1, W, eps)
    w2, b2 = _fold_conv_bn(p2, W, eps)

    if fuse_batch is None:
        # Overhead-bound small shapes -> fuse the whole batch into one grid
        # step (best on 1-TC v5e/v6e, and harmless on v7x at this size).
        # Big per-image work -> keep grid=(N,) "parallel" so v7x's 2 TCs split it.
        flops = 4 * (N * H) * (3 * WC) * WC        # 2 convs x 2 flops/MAC
        fuse_batch = flops < (64 << 20)
    n_blocks = 1 if fuse_batch else N
    rows_per_block = (N * H) // n_blocks

    kernel = functools.partial(_bottleneck_kernel, H=H, WC=WC, add=add)

    out2d = pl.pallas_call(
        kernel,
        out_shape=jax.ShapeDtypeStruct((N * H, WC), jnp.float32),
        grid=(n_blocks,),
        in_specs=[
            pl.BlockSpec((rows_per_block, WC), lambda i: (i, 0)),
            pl.BlockSpec((3, WC, WC), lambda i: (0, 0, 0)),   # resident weights
            pl.BlockSpec((1, WC), lambda i: (0, 0)),
            pl.BlockSpec((3, WC, WC), lambda i: (0, 0, 0)),
            pl.BlockSpec((1, WC), lambda i: (0, 0)),
        ],
        out_specs=pl.BlockSpec((rows_per_block, WC), lambda i: (i, 0)),
        compiler_params=pltpu.CompilerParams(
            dimension_semantics=("parallel",)),
    )(x2d, w1, b1, w2, b2)

    # (N*H, W*C) -> (N, H, W, C) -> NCHW
    return jnp.transpose(out2d.reshape(N, H, W, C), (0, 3, 1, 2))


# ------------------------------ Reference ----------------------------------- #
def _conv_bn_silu_ref(x, p, eps=1e-5):
    w, g, b, m, v = p
    y = jax.lax.conv_general_dilated(
        x, w, window_strides=(1, 1), padding="SAME",
        dimension_numbers=("NCHW", "OIHW", "NCHW"))
    scale = g / jnp.sqrt(v + eps)
    bias = b - m * scale
    y = y * scale[None, :, None, None] + bias[None, :, None, None]
    return y * jax.nn.sigmoid(y)


def bottleneck_ref(x, p1, p2, add=True):
    y = _conv_bn_silu_ref(x, p1)
    y = _conv_bn_silu_ref(y, p2)
    return x + y if add else y


# -------------------------------- Main --------------------------------------- #
if __name__ == "__main__":
    # Bottleneck(c1=8, c2=8, _conv=Conv, shortcut=True, k=(3,3)) with c_ == c1 == c2
    # W * C = 16 * 8 = 128  -> fully lane-dense folded layout.
    N, C, H, W = 2, 8, 16, 16
    key = jax.random.PRNGKey(0)
    ks = jax.random.split(key, 11)

    x = jax.random.normal(ks[0], (N, C, H, W), jnp.float32)

    def make_params(kw, kg, kb, km, kv):
        w = jax.random.normal(kw, (C, C, 3, 3), jnp.float32) * 0.1    # Conv2d weight (OIHW)
        gamma = 1.0 + 0.1 * jax.random.normal(kg, (C,), jnp.float32)  # BN weight
        beta = 0.1 * jax.random.normal(kb, (C,), jnp.float32)         # BN bias
        mean = 0.1 * jax.random.normal(km, (C,), jnp.float32)         # BN running_mean
        var = jnp.abs(jax.random.normal(kv, (C,), jnp.float32)) + 0.5  # BN running_var
        return (w, gamma, beta, mean, var)

    p1 = make_params(*ks[1:6])
    p2 = make_params(*ks[6:11])

    out = bottleneck_pallas(x, p1, p2, add=True)
    out = jax.block_until_ready(out)

    ref = bottleneck_ref(x, p1, p2, add=True)
    assert out.shape == (N, C, H, W)
    # bf16 MXU inputs + approx-EUP reciprocal: loosen from 1e-4 to 5e-2.
    err = jnp.max(jnp.abs(out - ref))
    assert jnp.allclose(out, ref, rtol=5e-2, atol=5e-2), f"max abs err = {err}"

    print("KERNEL_OK")
</pallas_src>

<mosaic_0001>
module attributes {stable_mosaic.version = 11 : i64} {
  func.func @_bottleneck_kernel(%arg0: i32, %arg1: memref<32x128xbf16, #tpu.memory_space<vmem>>, %arg2: memref<3x128x128xbf16, #tpu.memory_space<vmem>>, %arg3: memref<1x128xf32, #tpu.memory_space<vmem>>, %arg4: memref<3x128x128xbf16, #tpu.memory_space<vmem>>, %arg5: memref<1x128xf32, #tpu.memory_space<vmem>>, %arg6: memref<32x128xf32, #tpu.memory_space<vmem>>) attributes {dimension_semantics = [#tpu.dimension_semantics<parallel>], iteration_bounds = array<i64: 1>, scalar_prefetch = 0 : i64, scratch_operands = 0 : i64, tpu.core_type = #tpu.core_type<tc>, window_params = [{transform_indices = @transform_0, window_bounds = array<i64: 32, 128>}, {pipeline_mode = #tpu.pipeline_mode<synchronous>, transform_indices = @transform_1, window_bounds = array<i64: 3, 128, 128>}, {pipeline_mode = #tpu.pipeline_mode<synchronous>, transform_indices = @transform_2, window_bounds = array<i64: 1, 128>}, {pipeline_mode = #tpu.pipeline_mode<synchronous>, transform_indices = @transform_3, window_bounds = array<i64: 3, 128, 128>}, {pipeline_mode = #tpu.pipeline_mode<synchronous>, transform_indices = @transform_4, window_bounds = array<i64: 1, 128>}, {transform_indices = @transform_5, window_bounds = array<i64: 32, 128>}]} {
    %c0 = arith.constant 0 : index
    %c0_0 = arith.constant 0 : index
    %0 = vector.load %arg1[%c0, %c0_0] : memref<32x128xbf16, #tpu.memory_space<vmem>>, vector<32x128xbf16>
    %1 = tpu.iota {dimensions = array<i32: 0>} : vector<32x1xi32>
    %c16_i32 = arith.constant 16 : i32
    %c0_i32 = arith.constant 0 : i32
    %2 = arith.cmpi eq, %c16_i32, %c0_i32 : i32
    %c1_i32 = arith.constant 1 : i32
    %3 = arith.select %2, %c1_i32, %c16_i32 : i32
    %4 = vector.broadcast %3 : i32 to vector<32x1xi32>
    %5 = arith.remsi %1, %4 : vector<32x1xi32>
    %c0_i32_1 = arith.constant 0 : i32
    %6 = vector.broadcast %c0_i32_1 : i32 to vector<32x1xi32>
    %7 = arith.cmpi ne, %5, %6 : vector<32x1xi32>
    %c0_i32_2 = arith.constant 0 : i32
    %8 = vector.broadcast %c0_i32_2 : i32 to vector<32x1xi32>
    %9 = arith.cmpi slt, %5, %8 : vector<32x1xi32>
    %c0_i32_3 = arith.constant 0 : i32
    %10 = arith.cmpi slt, %3, %c0_i32_3 : i32
    %11 = vector.broadcast %10 : i1 to vector<32x1xi1>
    %12 = vector.broadcast %11 : vector<32x1xi1> to vector<32x1xi1>
    %13 = arith.xori %9, %12 : vector<32x1xi1>
    %14 = arith.andi %13, %7 : vector<32x1xi1>
    %15 = vector.broadcast %3 : i32 to vector<32x1xi32>
    %16 = arith.addi %5, %15 : vector<32x1xi32>
    %17 = arith.select %14, %16, %5 : vector<32x1xi1>, vector<32x1xi32>
    %c0_i32_4 = arith.constant 0 : i32
    %18 = vector.broadcast %c0_i32_4 : i32 to vector<32x1xi32>
    %19 = arith.cmpi eq, %17, %18 : vector<32x1xi32>
    %c16_i32_5 = arith.constant 16 : i32
    %c0_i32_6 = arith.constant 0 : i32
    %20 = arith.cmpi eq, %c16_i32_5, %c0_i32_6 : i32
    %c1_i32_7 = arith.constant 1 : i32
    %21 = arith.select %20, %c1_i32_7, %c16_i32_5 : i32
    %22 = vector.broadcast %21 : i32 to vector<32x1xi32>
    %23 = arith.remsi %1, %22 : vector<32x1xi32>
    %c0_i32_8 = arith.constant 0 : i32
    %24 = vector.broadcast %c0_i32_8 : i32 to vector<32x1xi32>
    %25 = arith.cmpi ne, %23, %24 : vector<32x1xi32>
    %c0_i32_9 = arith.constant 0 : i32
    %26 = vector.broadcast %c0_i32_9 : i32 to vector<32x1xi32>
    %27 = arith.cmpi slt, %23, %26 : vector<32x1xi32>
    %c0_i32_10 = arith.constant 0 : i32
    %28 = arith.cmpi slt, %21, %c0_i32_10 : i32
    %29 = vector.broadcast %28 : i1 to vector<32x1xi1>
    %30 = vector.broadcast %29 : vector<32x1xi1> to vector<32x1xi1>
    %31 = arith.xori %27, %30 : vector<32x1xi1>
    %32 = arith.andi %31, %25 : vector<32x1xi1>
    %33 = vector.broadcast %21 : i32 to vector<32x1xi32>
    %34 = arith.addi %23, %33 : vector<32x1xi32>
    %35 = arith.select %32, %34, %23 : vector<32x1xi1>, vector<32x1xi32>
    %c15_i32 = arith.constant 15 : i32
    %36 = vector.broadcast %c15_i32 : i32 to vector<32x1xi32>
    %37 = arith.cmpi eq, %35, %36 : vector<32x1xi32>
    %cst = arith.constant 0.000000e+00 : bf16
    %38 = vector.broadcast %cst : bf16 to vector<1x128xbf16>
    %39 = vector.extract_strided_slice %0 {offsets = [0, 0], sizes = [31, 128], strides = [1, 1]} : vector<32x128xbf16> to vector<31x128xbf16>
    %40 = tpu.concatenate %38, %39 in 0 : vector<1x128xbf16>, vector<31x128xbf16> -> vector<32x128xbf16>
    %cst_11 = arith.constant 0.000000e+00 : bf16
    %41 = vector.broadcast %cst_11 : bf16 to vector<32x128xbf16>
    %42 = vector.shape_cast %19 : vector<32x1xi1> to vector<32x1xi1>
    %43 = vector.broadcast %42 : vector<32x1xi1> to vector<32x128xi1>
    %44 = arith.select %43, %41, %40 : vector<32x128xi1>, vector<32x128xbf16>
    %45 = vector.extract_strided_slice %0 {offsets = [1, 0], sizes = [31, 128], strides = [1, 1]} : vector<32x128xbf16> to vector<31x128xbf16>
    %46 = tpu.concatenate %45, %38 in 0 : vector<31x128xbf16>, vector<1x128xbf16> -> vector<32x128xbf16>
    %cst_12 = arith.constant 0.000000e+00 : bf16
    %47 = vector.broadcast %cst_12 : bf16 to vector<32x128xbf16>
    %48 = vector.shape_cast %37 : vector<32x1xi1> to vector<32x1xi1>
    %49 = vector.broadcast %48 : vector<32x1xi1> to vector<32x128xi1>
    %50 = arith.select %49, %47, %46 : vector<32x128xi1>, vector<32x128xbf16>
    %c0_13 = arith.constant 0 : index
    %c0_14 = arith.constant 0 : index
    %c0_15 = arith.constant 0 : index
    %51 = vector.load %arg2[%c0_13, %c0_14, %c0_15] : memref<3x128x128xbf16, #tpu.memory_space<vmem>>, vector<1x128x128xbf16>
    %52 = vector.shape_cast %51 : vector<1x128x128xbf16> to vector<128x128xbf16>
    %cst_16 = arith.constant dense<0.000000e+00> : vector<32x128xf32>
    %53 = tpu.matmul %44, %52, %cst_16 {dimension_numbers = #tpu.dot_dimension_numbers<[1], [0], [0], [1], [0, 0, 1, 1], [], []>} : vector<32x128xbf16>, vector<128x128xbf16>, vector<32x128xf32> -> vector<32x128xf32>
    %c1 = arith.constant 1 : index
    %c0_17 = arith.constant 0 : index
    %c0_18 = arith.constant 0 : index
    %54 = vector.load %arg2[%c1, %c0_17, %c0_18] : memref<3x128x128xbf16, #tpu.memory_space<vmem>>, vector<1x128x128xbf16>
    %55 = vector.shape_cast %54 : vector<1x128x128xbf16> to vector<128x128xbf16>
    %cst_19 = arith.constant dense<0.000000e+00> : vector<32x128xf32>
    %56 = tpu.matmul %0, %55, %cst_19 {dimension_numbers = #tpu.dot_dimension_numbers<[1], [0], [0], [1], [0, 0, 1, 1], [], []>} : vector<32x128xbf16>, vector<128x128xbf16>, vector<32x128xf32> -> vector<32x128xf32>
    %57 = arith.addf %53, %56 : vector<32x128xf32>
    %c2 = arith.constant 2 : index
    %c0_20 = arith.constant 0 : index
    %c0_21 = arith.constant 0 : index
    %58 = vector.load %arg2[%c2, %c0_20, %c0_21] : memref<3x128x128xbf16, #tpu.memory_space<vmem>>, vector<1x128x128xbf16>
    %59 = vector.shape_cast %58 : vector<1x128x128xbf16> to vector<128x128xbf16>
    %cst_22 = arith.constant dense<0.000000e+00> : vector<32x128xf32>
    %60 = tpu.matmul %50, %59, %cst_22 {dimension_numbers = #tpu.dot_dimension_numbers<[1], [0], [0], [1], [0, 0, 1, 1], [], []>} : vector<32x128xbf16>, vector<128x128xbf16>, vector<32x128xf32> -> vector<32x128xf32>
    %61 = arith.addf %57, %60 : vector<32x128xf32>
    %c0_23 = arith.constant 0 : index
    %c0_24 = arith.constant 0 : index
    %62 = vector.load %arg3[%c0_23, %c0_24] : memref<1x128xf32, #tpu.memory_space<vmem>>, vector<1x128xf32>
    %63 = vector.broadcast %62 : vector<1x128xf32> to vector<32x128xf32>
    %64 = arith.addf %61, %63 : vector<32x128xf32>
    %cst_25 = arith.constant 0.000000e+00 : f32
    %65 = vector.broadcast %cst_25 : f32 to vector<32x128xf32>
    %66 = arith.subf %65, %64 : vector<32x128xf32>
    %67 = math.exp %66 : vector<32x128xf32>
    %cst_26 = arith.constant 1.000000e+00 : f32
    %68 = vector.broadcast %cst_26 : f32 to vector<32x128xf32>
    %69 = arith.addf %68, %67 : vector<32x128xf32>
    %70 = tpu.reciprocal %69 {approx = true} : vector<32x128xf32> -> vector<32x128xf32>
    %71 = arith.mulf %64, %70 : vector<32x128xf32>
    %72 = arith.truncf %71 : vector<32x128xf32> to vector<32x128xbf16>
    %73 = vector.extract_strided_slice %72 {offsets = [0, 0], sizes = [31, 128], strides = [1, 1]} : vector<32x128xbf16> to vector<31x128xbf16>
    %74 = tpu.concatenate %38, %73 in 0 : vector<1x128xbf16>, vector<31x128xbf16> -> vector<32x128xbf16>
    %cst_27 = arith.constant 0.000000e+00 : bf16
    %75 = vector.broadcast %cst_27 : bf16 to vector<32x128xbf16>
    %76 = vector.shape_cast %19 : vector<32x1xi1> to vector<32x1xi1>
    %77 = vector.broadcast %76 : vector<32x1xi1> to vector<32x128xi1>
    %78 = arith.select %77, %75, %74 : vector<32x128xi1>, vector<32x128xbf16>
    %79 = vector.extract_strided_slice %72 {offsets = [1, 0], sizes = [31, 128], strides = [1, 1]} : vector<32x128xbf16> to vector<31x128xbf16>
    %80 = tpu.concatenate %79, %38 in 0 : vector<31x128xbf16>, vector<1x128xbf16> -> vector<32x128xbf16>
    %cst_28 = arith.constant 0.000000e+00 : bf16
    %81 = vector.broadcast %cst_28 : bf16 to vector<32x128xbf16>
    %82 = vector.shape_cast %37 : vector<32x1xi1> to vector<32x1xi1>
    %83 = vector.broadcast %82 : vector<32x1xi1> to vector<32x128xi1>
    %84 = arith.select %83, %81, %80 : vector<32x128xi1>, vector<32x128xbf16>
    %c0_29 = arith.constant 0 : index
    %c0_30 = arith.constant 0 : index
    %c0_31 = arith.constant 0 : index
    %85 = vector.load %arg4[%c0_29, %c0_30, %c0_31] : memref<3x128x128xbf16, #tpu.memory_space<vmem>>, vector<1x128x128xbf16>
    %86 = vector.shape_cast %85 : vector<1x128x128xbf16> to vector<128x128xbf16>
    %cst_32 = arith.constant dense<0.000000e+00> : vector<32x128xf32>
    %87 = tpu.matmul %78, %86, %cst_32 {dimension_numbers = #tpu.dot_dimension_numbers<[1], [0], [0], [1], [0, 0, 1, 1], [], []>} : vector<32x128xbf16>, vector<128x128xbf16>, vector<32x128xf32> -> vector<32x128xf32>
    %c1_33 = arith.constant 1 : index
    %c0_34 = arith.constant 0 : index
    %c0_35 = arith.constant 0 : index
    %88 = vector.load %arg4[%c1_33, %c0_34, %c0_35] : memref<3x128x128xbf16, #tpu.memory_space<vmem>>, vector<1x128x128xbf16>
    %89 = vector.shape_cast %88 : vector<1x128x128xbf16> to vector<128x128xbf16>
    %cst_36 = arith.constant dense<0.000000e+00> : vector<32x128xf32>
    %90 = tpu.matmul %72, %89, %cst_36 {dimension_numbers = #tpu.dot_dimension_numbers<[1], [0], [0], [1], [0, 0, 1, 1], [], []>} : vector<32x128xbf16>, vector<128x128xbf16>, vector<32x128xf32> -> vector<32x128xf32>
    %91 = arith.addf %87, %90 : vector<32x128xf32>
    %c2_37 = arith.constant 2 : index
    %c0_38 = arith.constant 0 : index
    %c0_39 = arith.constant 0 : index
    %92 = vector.load %arg4[%c2_37, %c0_38, %c0_39] : memref<3x128x128xbf16, #tpu.memory_space<vmem>>, vector<1x128x128xbf16>
    %93 = vector.shape_cast %92 : vector<1x128x128xbf16> to vector<128x128xbf16>
    %cst_40 = arith.constant dense<0.000000e+00> : vector<32x128xf32>
    %94 = tpu.matmul %84, %93, %cst_40 {dimension_numbers = #tpu.dot_dimension_numbers<[1], [0], [0], [1], [0, 0, 1, 1], [], []>} : vector<32x128xbf16>, vector<128x128xbf16>, vector<32x128xf32> -> vector<32x128xf32>
    %95 = arith.addf %91, %94 : vector<32x128xf32>
    %c0_41 = arith.constant 0 : index
    %c0_42 = arith.constant 0 : index
    %96 = vector.load %arg5[%c0_41, %c0_42] : memref<1x128xf32, #tpu.memory_space<vmem>>, vector<1x128xf32>
    %97 = vector.broadcast %96 : vector<1x128xf32> to vector<32x128xf32>
    %98 = arith.addf %95, %97 : vector<32x128xf32>
    %cst_43 = arith.constant 0.000000e+00 : f32
    %99 = vector.broadcast %cst_43 : f32 to vector<32x128xf32>
    %100 = arith.subf %99, %98 : vector<32x128xf32>
    %101 = math.exp %100 : vector<32x128xf32>
    %cst_44 = arith.constant 1.000000e+00 : f32
    %102 = vector.broadcast %cst_44 : f32 to vector<32x128xf32>
    %103 = arith.addf %102, %101 : vector<32x128xf32>
    %104 = tpu.reciprocal %103 {approx = true} : vector<32x128xf32> -> vector<32x128xf32>
    %105 = arith.mulf %98, %104 : vector<32x128xf32>
    %106 = arith.extf %0 : vector<32x128xbf16> to vector<32x128xf32>
    %107 = arith.addf %105, %106 : vector<32x128xf32>
    %c0_45 = arith.constant 0 : index
    %c0_46 = arith.constant 0 : index
    %108 = vector.load %arg6[%c0_45, %c0_46] : memref<32x128xf32, #tpu.memory_space<vmem>>, vector<32x128xf32>
    tpu.vector_store %arg6[%c0_45, %c0_46], %107 {strides = array<i32>} : memref<32x128xf32, #tpu.memory_space<vmem>>, vector<32x128xf32>,
    return
  }
  func.func @transform_0(%arg0: i32) -> (i32, i32) {
    %c0_i32 = arith.constant 0 : i32
    %c0_i32_0 = arith.constant 0 : i32
    return %arg0, %c0_i32 : i32, i32
  }
  func.func @transform_1(%arg0: i32) -> (i32, i32, i32) {
    %c0_i32 = arith.constant 0 : i32
    %c0_i32_0 = arith.constant 0 : i32
    %c0_i32_1 = arith.constant 0 : i32
    %c0_i32_2 = arith.constant 0 : i32
    return %c0_i32, %c0_i32_0, %c0_i32_1 : i32, i32, i32
  }
  func.func @transform_2(%arg0: i32) -> (i32, i32) {
    %c0_i32 = arith.constant 0 : i32
    %c0_i32_0 = arith.constant 0 : i32
    %c0_i32_1 = arith.constant 0 : i32
    return %c0_i32, %c0_i32_0 : i32, i32
  }
  func.func @transform_3(%arg0: i32) -> (i32, i32, i32) {
    %c0_i32 = arith.constant 0 : i32
    %c0_i32_0 = arith.constant 0 : i32
    %c0_i32_1 = arith.constant 0 : i32
    %c0_i32_2 = arith.constant 0 : i32
    return %c0_i32, %c0_i32_0, %c0_i32_1 : i32, i32, i32
  }
  func.func @transform_4(%arg0: i32) -> (i32, i32) {
    %c0_i32 = arith.constant 0 : i32
    %c0_i32_0 = arith.constant 0 : i32
    %c0_i32_1 = arith.constant 0 : i32
    return %c0_i32, %c0_i32_0 : i32, i32
  }
  func.func @transform_5(%arg0: i32) -> (i32, i32) {
    %c0_i32 = arith.constant 0 : i32
    %c0_i32_0 = arith.constant 0 : i32
    return %arg0, %c0_i32 : i32, i32
  }
}

</mosaic_0001>

<bundles_post_ra>
// kernel: tpu_custom_call.1
= control target key start
LH: loop header
LB: loop body
LE: loop exit
PB: predicated region body
PF: predicated region fallthrough
CT: control target
= control target key end

     0   :  { %10 = vsyncpa [#allocation3], 0  ;;  %s1512_s0 = inlined_call_operand.hbm [shape: bf16[32,128], index: 0, kind: input, shape index: {}]   ;;  %s1513_s1 = inlined_call_operand.hbm [shape: bf16[3,128,128], index: 1, kind: input, shape index: {}]   ;;  %s1514_s2 = inlined_call_operand.vmem [shape: f32[1,128], index: 2, kind: input, shape index: {}]   ;;  %s1515_s3 = inlined_call_operand.hbm [shape: bf16[3,128,128], index: 3, kind: input, shape index: {}]   ;;  %s1516_s4 = inlined_call_operand.vmem [shape: f32[1,128], index: 4, kind: input, shape index: {}]   ;;  %s1517_s5 = inlined_call_operand.hbm [shape: f32[32,128], index: 5, kind: output, shape index: {}]  }
   0x1   :  { %11 = vsyncpa [#allocation6], 0 }
   0x2   :  { %12 = vsyncpa [#allocation4], 0  ;;  %s30_s20 = sshll.u32 %s1513_s1, 4  ;;  %s1328_s21 = smov [#allocation5]   ;;  %s31_s20 = int_to_ptr.hbm [resolvable:$true] %s30_s20 }
   0x3   :  { %s32_s22 = sshll.u32 %s1328_s21, 4  ;;  %s17_s25 = sshll.u32 %s1512_s0, 4  ;;  %s33_s22 = int_to_ptr.vmem [resolvable:$true] %s32_s22  ;;  %s18_s25 = int_to_ptr.hbm [resolvable:$true] %s17_s25 }
   0x4   :  { %s1329_s26 = smov 64   ;;  %s1330_s27 = smov 4  }
   0x5   :  { %38 = dma.hbm_to_vmem [thread:$0]  %s31_s20, 3072, %s33_s22, [#allocation6], %s1329_s26, %s1329_s26, %s1330_s27  }
   0x6   :  { %s1331_s28 = smov [#allocation2]   ;;  %s45_s7 = sshll.u32 %s1515_s3, 4  ;;  %s46_s7 = int_to_ptr.hbm [resolvable:$true] %s45_s7 }
   0x7   :  { %s19_s29 = sshll.u32 %s1331_s28, 4  ;;  %s1332_s1 = smov [#allocation7]   ;;  %s20_s29 = int_to_ptr.vmem [resolvable:$true] %s19_s29 }
   0x8   :  { %25 = dma.hbm_to_vmem [thread:$0]  %s18_s25, 256, %s20_s29, [#allocation3], %s1329_s26, %s1329_s26, %s1330_s27  }
   0x9   :  { %s47_s8 = sshll.u32 %s1332_s1, 4  ;;  %s48_s8 = int_to_ptr.vmem [resolvable:$true] %s47_s8 }
   0xa   :  { %53 = dma.hbm_to_vmem [thread:$0]  %s46_s7, 3072, %s48_s8, [#allocation6], %s1329_s26, %s1329_s26, %s1330_s27  }
   0xb   :  { %1322 = dma.done.wait [#allocation3], 256  }
   0xc   :  { %1323 = vsyncadd [#allocation3], 4294967040 }
   0xd   :  { %1324 = dma.done.wait [#allocation6], 6144  }
   0xe   :  { %1325 = vsyncadd [#allocation6], 4294961152  ;;  %v75_v0 = vlaneseq  ;;  %v1133_v2 = vld [vmem:[#allocation5 + $0x78] sm:$0xff]  ;;  %v1132_v6 = vld [vmem:[#allocation5 + $0x70] sm:$0xff]  ;;  %vm1333_vm2 = vmmov 0   ;;  %v1334_v19 = vmov 0  }
   0xf   :  { %v1125_v3 = vld [vmem:[#allocation5 + $0x38] sm:$0xff]  ;;  %337 = vmatpush.bf16.msra.mxu0 %v1133_v2  ;;  %v1124_v7 = vld [vmem:[#allocation5 + $0x30] sm:$0xff]  ;;  %v1131_v11 = vld [vmem:[#allocation5 + $0x68] sm:$0xff]  ;;  %v1396_v39 = vunpack.c.l.b16 %v1334_v19  ;;  %v1399_v40 = vunpack.c.h.b16 %v1334_v19  ;;  %vm146_vm6 = vsmask.f32 256  ;;  %vm164_vm7 = vcmask 1040384  }
  0x10   :  { %v76_v1 = vshrl.u32 %v75_v0, 7  ;;  %v1141_v4 = vld [vmem:[#allocation5 + $0xb8] sm:$0xff]  ;;  %404 = vmatpush.bf16.msra.mxu1 %v1125_v3  ;;  %v1140_v8 = vld [vmem:[#allocation5 + $0xb0] sm:$0xff]  ;;  %v1123_v12 = vld [vmem:[#allocation5 + $0x28] sm:$0xff]  ;;  %vm205_vm13 = vsmask.f32 7424 }
  0x11   :  { %488 = vmatpush.bf16.msra.mxu2 %v1141_v4  ;;  %v1139_v13 = vld [vmem:[#allocation5 + $0xa8] sm:$0xff]  ;;  %vm176_vm3 = vmpackc.low %vm1333_vm2, %vm1333_vm2  ;;  %v1130_v15 = vld [vmem:[#allocation5 + $0x60] sm:$0xff]  ;;  %s894_s13 = sshll.u32 %s1517_s5, 4  ;;  %s1336_s14 = smov 128   ;;  %s895_s13 = int_to_ptr.hbm [resolvable:$true] %s894_s13 }
  0x12   :  { %v77_v5 = vadd.s32 8, %v76_v1  ;;  %v84_v9 = vand.u32 15, %v76_v1  ;;  %v1122_v16 = vld [vmem:[#allocation5 + $0x20] sm:$0xff]  ;;  %v1381_v18 = vld [vmem:[#allocation2] sm:$0xff]  ;;  %v180_v21 = vsel %vm176_vm3, 65537, %v1334_v19  ;;  %v1129_v22 = vld [vmem:[#allocation5 + $0x58] sm:$0xff] }
  0x13   :  { %338 = vmatpush.bf16.msra.mxu0 %v1132_v6  ;;  %v1138_v17 = vld [vmem:[#allocation5 + $0xa0] sm:$0xff]  ;;  %v1121_v23 = vld [vmem:[#allocation5 + $0x18] sm:$0xff]  ;;  %v78_v25 = vadd.s32 16, %v76_v1  ;;  %v148_v27 = vshrl.u32 %v1381_v18, 16  ;;  %v79_v28 = vadd.s32 24, %v76_v1  ;;  %v151_v29 = vshll.u32 %v1381_v18, 16  ;;  %vm1412_vm10 = vmand %vm164_vm7, %vm146_vm6 }
  0x14   :  { %v91_v10 = vand.u32 15, %v77_v5  ;;  %405 = vmatpush.bf16.msra.mxu1 %v1124_v7  ;;  %vm128_vm0 = vcmp.eq.s32.totalorder %v84_v9, 0  ;;  %v1137_v26 = vld [vmem:[#allocation5 + $0x98] sm:$0xff]  ;;  %v184_v31 = vunpack.c.l.b16 %v180_v21  ;;  %v1128_v34 = vld [vmem:[#allocation5 + $0x50] sm:$0xff]  ;;  %v1127_v47 = vld [vmem:[#allocation5 + $0x48] sm:$0xff]  ;;  %s1337_s15 = smov 8  }
  0x15   :  { %489 = vmatpush.bf16.msra.mxu2 %v1140_v8  ;;  %vm175_vm4 = vmpackc.low %vm128_vm0, %vm128_vm0  ;;  %v1391_v32 = vld [vmem:[#allocation2 + $0x8] sm:$0xff]  ;;  %v1120_v35 = vld [vmem:[#allocation5 + $0x10] sm:$0xff]  ;;  %v98_v36 = vand.u32 15, %v78_v25  ;;  %v1393_v38 = vrot.slane %v148_v27, 7  ;;  %v105_v41 = vand.u32 15, %v79_v28  ;;  %v206_v44 = vrot.slane %v151_v29, 1 }
  0x16   :  { %vm1377_vm1 = vcmp.eq.s32.totalorder %v91_v10, 15  ;;  %v179_v20 = vsel %vm175_vm4, 65537, %v1334_v19  ;;  %v1136_v37 = vld [vmem:[#allocation5 + $0x90] sm:$0xff]  ;;  %v917_v43 = vunpack.i.l.s16 %v184_v31  ;;  %v158_v45 = vshll.u32 %v1391_v32, 16  ;;  %v1119_v48 = vld [vmem:[#allocation5 + $0x8] sm:$0xff]  ;;  %v1126_v56 = vld [vmem:[#allocation5 + $0x40] sm:$0xff] }
  0x17   :  { %339 = vmatpush.bf16.msra.mxu0 %v1131_v11  ;;  %vm225_vm5 = vmpackc.low %vm1377_vm1, %vm1377_vm1  ;;  %v183_v30 = vunpack.c.l.b16 %v179_v20  ;;  %vm1402_vm8 = vcmp.eq.s32.totalorder %v98_v36, 0  ;;  %v1135_v50 = vld [vmem:[#allocation5 + $0x88] sm:$0xff]  ;;  %v153_v51 = vor.u32 %v151_v29, %v1393_v38  ;;  %vm1407_vm9 = vcmp.eq.s32.totalorder %v105_v41, 15  ;;  %v1118_v57 = vld [vmem:[#allocation5] sm:$0xff] }
  0x18   :  { %406 = vmatpush.bf16.msra.mxu1 %v1123_v12  ;;  %v229_v24 = vsel %vm225_vm5, 65537, %v1334_v19  ;;  %vm194_vm12 = vcmp.ne.s32.totalorder %v917_v43, %v1399_v40  ;;  %v207_v54 = vor.u32 %v206_v44, %v148_v27  ;;  %v208_v55 = vrot.slane %v158_v45, 1  ;;  %vm177_vm0 = vmpackc.low %vm1402_vm8, %vm1402_vm8  ;;  %v1134_v58 = vld [vmem:[#allocation5 + $0x80] sm:$0xff]  ;;  %v1155_v20 = vld [vmem:[#allocation7 + $0x68] sm:$0xff] }
  0x19   :  { %490 = vmatpush.bf16.msra.mxu2 %v1139_v13  ;;  %v233_v33 = vunpack.c.l.b16 %v229_v24  ;;  %v916_v42 = vunpack.i.l.s16 %v183_v30  ;;  %vm242_vm14 = vcmp.ne.s32.totalorder %v917_v43, %v1396_v39  ;;  %vm227_vm1 = vmpackc.low %vm1407_vm9, %vm1407_vm9  ;;  %v166_v59 = vsel %vm1412_vm10, 0, %v153_v51  ;;  %v1149_v21 = vld [vmem:[#allocation7 + $0x38] sm:$0xff]  ;;  %v1147_v25 = vld [vmem:[#allocation7 + $0x28] sm:$0xff] }
  0x1a   :  { %v209_v61 = vsel %vm205_vm13, %v207_v54, %v208_v55  ;;  %v181_v63 = vsel %vm177_vm0, 65537, %v1334_v19  ;;  %v231_v1 = vsel %vm227_vm1, 65537, %v1334_v19  ;;  %v155_v3 = vshrl.u32 %v1391_v32, 16  ;;  %v1156_v19 = vld [vmem:[#allocation7 + $0x70] sm:$0xff]  ;;  %v1153_v24 = vld [vmem:[#allocation7 + $0x58] sm:$0xff]  ;;  %v1146_v29 = vld [vmem:[#allocation7 + $0x20] sm:$0xff] }
  0x1b   :  { %340 = vmatpush.bf16.msra.mxu0 %v1130_v15  ;;  %v921_v46 = vunpack.i.l.s16 %v233_v33  ;;  %vm193_vm11 = vcmp.ne.s32.totalorder %v916_v42, %v1396_v39  ;;  %v185_v4 = vunpack.c.l.b16 %v181_v63  ;;  %v235_v5 = vunpack.c.l.b16 %v231_v1  ;;  %v1152_v28 = vld [vmem:[#allocation7 + $0x50] sm:$0xff]  ;;  %v1165_v31 = vld [vmem:[#allocation7 + $0xb8] sm:$0xff]  ;;  %v1150_v41 = vld [vmem:[#allocation7 + $0x40] sm:$0xff] }
  0x1c   :  { %407 = vmatpush.bf16.msra.mxu1 %v1122_v16  ;;  %vm1432_vm2 = vmpackc.low %vm194_vm12, %vm193_vm11  ;;  %v157_v6 = vrot.slane %v155_v3, 7  ;;  %vm213_vm4 = vcmask 1047552   ;;  %v210_v10 = vor.u32 %v208_v55, %v155_v3  ;;  %v1144_v42 = vld [vmem:[#allocation7 + $0x10] sm:$0xff]  ;;  %v1163_v44 = vld [vmem:[#allocation7 + $0xa8] sm:$0xff] }
  0x1d   :  { %491 = vmatpush.bf16.msra.mxu2 %v1138_v17  ;;  %vm243_vm15 = vcmp.ne.s32.totalorder %v921_v46, %v1399_v40  ;;  %v203_v0 = vsel %vm1432_vm2, 0, %v166_v59  ;;  %v918_v7 = vunpack.i.l.s16 %v185_v4  ;;  %v923_v8 = vunpack.i.l.s16 %v235_v5  ;;  %vm1453_vm7 = vmand %vm213_vm4, %vm205_vm13  ;;  %v1162_v52 = vld [vmem:[#allocation7 + $0xa0] sm:$0xff] }
  0x1e   :  { %vm1439_vm3 = vmpackc.low %vm243_vm15, %vm242_vm14  ;;  %v160_v9 = vor.u32 %v158_v45, %v157_v6  ;;  %v215_v14 = vsel %vm1453_vm7, %v210_v10, 0  ;;  %v1142_v55 = vld [vmem:[#allocation7] sm:$0xff] }
  0x1f   :  { %341 = vmatpush.bf16.msra.mxu0 %v1129_v22  ;;  %v252_v2 = vsel %vm1439_vm3, 0, %v209_v61  ;;  %vm200_vm5 = vcmp.ne.s32.totalorder %v918_v7, %v1396_v39  ;;  %vm250_vm8 = vcmp.ne.s32.totalorder %v923_v8, %v1399_v40  ;;  %v1154_v22 = vld [vmem:[#allocation7 + $0x60] sm:$0xff]  ;;  %v1164_v39 = vld [vmem:[#allocation7 + $0xb0] sm:$0xff]  ;;  %v1159_v7 = vld [vmem:[#allocation7 + $0x88] sm:$0xff] }
  0x20   :  { %408 = vmatpush.bf16.msra.mxu1 %v1121_v23  ;;  %v161_v12 = vsel %vm146_vm6, %v1393_v38, %v160_v9  ;;  %vm1462_vm9 = vmpackc.low %vm194_vm12, %vm200_vm5  ;;  %v1148_v23 = vld [vmem:[#allocation7 + $0x30] sm:$0xff] }
  0x21   :  { %492 = vmatpush.bf16.msra.mxu2 %v1137_v26  ;;  %vm1470_vm11 = vmpackc.low %vm250_vm8, %vm242_vm14  ;;  %v204_v16 = vsel %vm1462_vm9, 0, %v161_v12 }
  0x22   :  { %v253_v17 = vsel %vm1470_vm11, 0, %v215_v14 }
  0x23   :  { %342 = vmatpush.bf16.msra.mxu0 %v1128_v34  ;;  %v1151_v34 = vld [vmem:[#allocation7 + $0x48] sm:$0xff] }
  0x24   :  { %409 = vmatpush.bf16.msra.mxu1 %v1120_v35  ;;  %v1145_v35 = vld [vmem:[#allocation7 + $0x18] sm:$0xff] }
  0x25   :  { %493 = vmatpush.bf16.msra.mxu2 %v1136_v37 }
  0x27   :  { %343 = vmatpush.bf16.msra.mxu0 %v1127_v47 }
  0x28   :  { %410 = vmatpush.bf16.msra.mxu1 %v1119_v48  ;;  %v1143_v48 = vld [vmem:[#allocation7 + $0x8] sm:$0xff] }
  0x29   :  { %494 = vmatpush.bf16.msra.mxu2 %v1135_v50 }
  0x2b   :  { %344 = vmatpush.bf16.msra.mxu0 %v1126_v56 }
  0x2c   :  { %411 = vmatpush.bf16.msra.mxu1 %v1118_v57 }
  0x2d   :  { %495 = vmatpush.bf16.msra.mxu2 %v1134_v58  ;;  %v1161_v58 = vld [vmem:[#allocation7 + $0x98] sm:$0xff] }
  0x2e   :  { %345 = vmatmul.bf16.vlgmr.msra.gmra.mxu0 %v1381_v18  ;;  %v1157_v18 = vld [vmem:[#allocation7 + $0x78] sm:$0xff] }
  0x2f   :  { %412 = vmatmul.bf16.vlgmr.msra.gmra.mxu1 %v203_v0  ;;  %670 = vmatpush.bf16.msra.mxu3 %v1157_v18 }
  0x30   :  { %496 = vmatmul.bf16.vlgmr.msra.gmra.mxu2 %v252_v2  ;;  %737 = vmatpush.bf16.msrb.mxu0 %v1149_v21  ;;  %v1160_v2 = vld [vmem:[#allocation7 + $0x90] sm:$0xff] }
  0x31   :  { %1166 = vmatpush.bf16.msrb.mxu2 %v1149_v21  ;;  %821 = vmatpush.bf16.msrb.mxu1 %v1165_v31 }
  0x33   :  { %671 = vmatpush.bf16.msra.mxu3 %v1156_v19 }
  0x34   :  { %738 = vmatpush.bf16.msrb.mxu0 %v1148_v23 }
  0x35   :  { %1167 = vmatpush.bf16.msrb.mxu2 %v1148_v23  ;;  %822 = vmatpush.bf16.msrb.mxu1 %v1164_v39 }
  0x37   :  { %672 = vmatpush.bf16.msra.mxu3 %v1155_v20 }
  0x38   :  { %739 = vmatpush.bf16.msrb.mxu0 %v1147_v25 }
  0x39   :  { %1168 = vmatpush.bf16.msrb.mxu2 %v1147_v25  ;;  %823 = vmatpush.bf16.msrb.mxu1 %v1163_v44 }
  0x3b   :  { %673 = vmatpush.bf16.msra.mxu3 %v1154_v22 }
  0x3c   :  { %740 = vmatpush.bf16.msrb.mxu0 %v1146_v29 }
  0x3d   :  { %1169 = vmatpush.bf16.msrb.mxu2 %v1146_v29  ;;  %824 = vmatpush.bf16.msrb.mxu1 %v1162_v52 }
  0x3e   :  { %350 = vmatmul.bf16.gmra.mxu0 %v1391_v32  ;;  %v1482_v32 = vld [vmem:[%s1514_s2] ss:$0 sm:$0xff] }
  0x3f   :  { %417 = vmatmul.bf16.gmra.mxu1 %v204_v16  ;;  %674 = vmatpush.bf16.msra.mxu3 %v1153_v24 }
  0x40   :  { %501 = vmatmul.bf16.gmra.mxu2 %v253_v17  ;;  %741 = vmatpush.bf16.msrb.mxu0 %v1145_v35  ;;  %v1158_v17 = vld [vmem:[#allocation7 + $0x80] sm:$0xff] }
  0x41   :  { %1170 = vmatpush.bf16.msrb.mxu2 %v1145_v35  ;;  %825 = vmatpush.bf16.msrb.mxu1 %v1161_v58 }
  0x43   :  { %675 = vmatpush.bf16.msra.mxu3 %v1152_v28 }
  0x44   :  { %742 = vmatpush.bf16.msrb.mxu0 %v1144_v42 }
  0x45   :  { %1171 = vmatpush.bf16.msrb.mxu2 %v1144_v42  ;;  %826 = vmatpush.bf16.msrb.mxu1 %v1160_v2 }
  0x47   :  { %676 = vmatpush.bf16.msra.mxu3 %v1151_v34 }
  0x48   :  { %743 = vmatpush.bf16.msrb.mxu0 %v1143_v48 }
  0x49   :  { %1172 = vmatpush.bf16.msrb.mxu2 %v1143_v48  ;;  %827 = vmatpush.bf16.msrb.mxu1 %v1159_v7 }
  0x4b   :  { %677 = vmatpush.bf16.msra.mxu3 %v1150_v41 }
  0x4c   :  { %744 = vmatpush.bf16.msrb.mxu0 %v1142_v55 }
  0x4d   :  { %1173 = vmatpush.bf16.msrb.mxu2 %v1142_v55  ;;  %828 = vmatpush.bf16.msrb.mxu1 %v1158_v17 }
  0x4f   :  { %1174 = vmatpush.bf16.msrb.mxu3 %v1165_v31 }
  0x53   :  { %1175 = vmatpush.bf16.msrb.mxu3 %v1164_v39 }
  0x57   :  { %1176 = vmatpush.bf16.msrb.mxu3 %v1163_v44 }
  0x5b   :  { %1177 = vmatpush.bf16.msrb.mxu3 %v1162_v52 }
  0x5f   :  { %1178 = vmatpush.bf16.msrb.mxu3 %v1161_v58 }
  0x63   :  { %1179 = vmatpush.bf16.msrb.mxu3 %v1160_v2 }
  0x67   :  { %1180 = vmatpush.bf16.msrb.mxu3 %v1159_v7 }
  0x6b   :  { %1181 = vmatpush.bf16.msrb.mxu3 %v1158_v17 }
  0xab   :  { %v346_v26 = vpop.f32.mrf.mxu0 }
  0xac   :  { %v413_v27 = vpop.f32.mrf.mxu1 }
  0xad   :  { %v414_v30 = vadd.f32 %v413_v27, %v346_v26 }
  0xb3   :  { %v497_v33 = vpop.f32.mrf.mxu2  ;;  %v348_v37 = vpop.f32.mrf.mxu0 }
  0xb4   :  { %v507_v36 = vadd.f32 %v497_v33, %v414_v30  ;;  %v415_v38 = vpop.f32.mrf.mxu1 }
  0xb5   :  { %v416_v46 = vadd.f32 %v415_v38, %v348_v37 }
  0xb6   :  { %v1485_v40 = vadd.f32 %v1482_v32, %v507_v36 }
  0xb8   :  { %v519_v43 = vsub.f32 0.0, %v1485_v40 }
  0xba   :  { %v523_v45 = vmul.f32 1.442695, %v519_v43 }
  0xbb   :  { %v499_v47 = vpop.f32.mrf.mxu2  ;;  %v351_v50 = vpop.f32.mrf.mxu0 }
  0xbc   :  { %1194 = vpow2.f32 %v523_v45  ;;  %v508_v49 = vadd.f32 %v499_v47, %v416_v46  ;;  %v418_v51 = vpop.f32.mrf.mxu1 }
  0xbd   :  { %v419_v57 = vadd.f32 %v418_v51, %v351_v50 }
  0xbe   :  { %v516_v54 = vadd.f32 %v1482_v32, %v508_v49 }
  0xc0   :  { %v520_v56 = vsub.f32 0.0, %v516_v54 }
  0xc2   :  { %v1195_v59 = vpop.eup %1194  ;;  %v525_v61 = vmul.f32 1.442695, %v520_v56 }
  0xc3   :  { %v531_v63 = vadd.f32 1.0, %v1195_v59  ;;  %v502_v0 = vpop.f32.mrf.mxu2  ;;  %v353_v4 = vpop.f32.mrf.mxu0 }
  0xc4   :  { %1196 = vpow2.f32 %v525_v61  ;;  %v509_v1 = vadd.f32 %v502_v0, %v419_v57  ;;  %v420_v5 = vpop.f32.mrf.mxu1 }
  0xc5   :  { %1198 = vrcp.f32 %v531_v63  ;;  %v421_v10 = vadd.f32 %v420_v5, %v353_v4 }
  0xc6   :  { %v517_v3 = vadd.f32 %v1482_v32, %v509_v1 }
  0xc8   :  { %v521_v6 = vsub.f32 0.0, %v517_v3 }
  0xca   :  { %v1197_v8 = vpop.eup %1196  ;;  %v527_v9 = vmul.f32 1.442695, %v521_v6 }
  0xcb   :  { %v532_v12 = vadd.f32 1.0, %v1197_v8  ;;  %v504_v14 = vpop.f32.mrf.mxu2  ;;  %v1199_v18 = vpop.eup %1198 }
  0xcc   :  { %1200 = vpow2.f32 %v527_v9  ;;  %v510_v16 = vadd.f32 %v504_v14, %v421_v10  ;;  %v539_v20 = vmul.f32 %v1199_v18, %v1485_v40 }
  0xcd   :  { %1202 = vrcp.f32 %v532_v12 }
  0xce   :  { %v518_v19 = vadd.f32 %v1482_v32, %v510_v16  ;;  %v543_v26 = vpack.c.bf16 %v539_v20, %v539_v20 }
  0xd0   :  { %v522_v21 = vsub.f32 0.0, %v518_v19  ;;  %v551_v29 = vunpack.c.l.b16 %v543_v26 }
  0xd2   :  { %v1201_v22 = vpop.eup %1200  ;;  %v529_v23 = vmul.f32 1.442695, %v522_v21 }
  0xd3   :  { %v1203_v24 = vpop.eup %1202  ;;  %v533_v25 = vadd.f32 1.0, %v1201_v22 }
  0xd4   :  { %v540_v27 = vmul.f32 %v1203_v24, %v516_v54  ;;  %1204 = vpow2.f32 %v529_v23 }
  0xd5   :  { %1206 = vrcp.f32 %v533_v25  ;;  %v71_v25 = vld [vmem:[#allocation2] sm:$0xff]  }
  0xd6   :  { %v544_v28 = vpack.c.bf16 %v540_v27, %v540_v27 }
  0xd8   :  { %v552_v30 = vunpack.c.l.b16 %v544_v28  ;;  %v876_v28 = vunpack.c.l.bf16 %v71_v25 }
  0xda   :  { %v1205_v31 = vpop.eup %1204  ;;  %v555_v32 = vpack.c.b16 %v552_v30, %v551_v29 }
  0xdb   :  { %v534_v33 = vadd.f32 1.0, %v1205_v31  ;;  %v1207_v35 = vpop.eup %1206 }
  0xdc   :  { %v558_v34 = vshrl.u32 %v555_v32, 16  ;;  %678 = vmatmul.bf16.vlgmr.msra.gmra.mxu3 %v555_v32  ;;  %v561_v37 = vshll.u32 %v555_v32, 16  ;;  %v541_v38 = vmul.f32 %v1207_v35, %v517_v3  ;;  %v1193_v3 = vld [vmem:[%s1516_s4] ss:$0 sm:$0xff]  ;;  %s1335_s4 = smov [#allocation8]  }
  0xdd   :  { %1208 = vrcp.f32 %v534_v33  ;;  %s892_s10 = sshll.u32 %s1335_s4, 4  ;;  %s893_s10 = int_to_ptr.vmem [resolvable:$true] %s892_s10 }
  0xde   :  { %v560_v36 = vrot.slane %v558_v34, 7  ;;  %v545_v43 = vpack.c.bf16 %v541_v38, %v541_v38  ;;  %v577_v48 = vrot.slane %v561_v37, 1 }
  0xe0   :  { %v563_v39 = vor.u32 %v561_v37, %v560_v36  ;;  %v553_v46 = vunpack.c.l.b16 %v545_v43  ;;  %v578_v52 = vor.u32 %v577_v48, %v558_v34  ;;  %v877_v43 = vunpack.c.h.bf16 %v71_v25 }
  0xe2   :  { %v574_v40 = vsel %vm1412_vm10, 0, %v563_v39 }
  0xe3   :  { %v1209_v41 = vpop.eup %1208  ;;  %v575_v42 = vsel %vm1432_vm2, 0, %v574_v40 }
  0xe4   :  { %v542_v44 = vmul.f32 %v1209_v41, %v518_v19  ;;  %745 = vmatmul.bf16.vlgmr.msrb.gmra.mxu0 %v575_v42 }
  0xe6   :  { %v546_v45 = vpack.c.bf16 %v542_v44, %v542_v44 }
  0xe8   :  { %v554_v47 = vunpack.c.l.b16 %v546_v45 }
  0xea   :  { %v556_v49 = vpack.c.b16 %v554_v47, %v553_v46  ;;  %v73_v46 = vld [vmem:[#allocation2 + $0x8] sm:$0xff]  }
  0xec   :  { %v565_v50 = vshrl.u32 %v556_v49, 16  ;;  %v568_v51 = vshll.u32 %v556_v49, 16  ;;  %683 = vmatmul.bf16.gmra.mxu3 %v556_v49  ;;  %v878_v49 = vunpack.c.l.bf16 %v73_v46 }
  0xee   :  { %v579_v54 = vrot.slane %v568_v51, 1  ;;  %v567_v55 = vrot.slane %v565_v50, 7 }
  0xf0   :  { %v580_v53 = vsel %vm205_vm13, %v578_v52, %v579_v54  ;;  %v570_v56 = vor.u32 %v568_v51, %v567_v55  ;;  %v581_v59 = vor.u32 %v579_v54, %v565_v50  ;;  %v879_v55 = vunpack.c.h.bf16 %v73_v46 }
  0xf1   :  { %v585_v60 = vsel %vm1439_vm3, 0, %v580_v53 }
  0xf2   :  { %829 = vmatmul.bf16.vlgmr.msrb.gmra.mxu1 %v585_v60  ;;  %v571_v57 = vsel %vm146_vm6, %v560_v36, %v570_v56  ;;  %v584_v61 = vsel %vm1453_vm7, %v581_v59, 0 }
  0xf3   :  { %v576_v58 = vsel %vm1462_vm9, 0, %v571_v57  ;;  %v586_v63 = vsel %vm1470_vm11, 0, %v584_v61 }
  0xf4   :  { %750 = vmatmul.bf16.vlgmr.msrb.gmra.mxu2 %v576_v58 }
  0xfc   :  { %834 = vmatmul.bf16.vlgmr.msrb.gmra.mxu3 %v586_v63 }
 0x15f   :  { %v679_v0 = vpop.f32.mrf.mxu3 }
 0x161   :  { %v746_v2 = vpop.f32.mrf.mxu0 }
 0x162   :  { %v747_v62 = vadd.f32 %v746_v2, %v679_v0 }
 0x167   :  { %v681_v1 = vpop.f32.mrf.mxu3 }
 0x169   :  { %v748_v7 = vpop.f32.mrf.mxu0 }
 0x16a   :  { %v749_v9 = vadd.f32 %v748_v7, %v681_v1 }
 0x16f   :  { %v684_v4 = vpop.f32.mrf.mxu3  ;;  %v830_v13 = vpop.f32.mrf.mxu1 }
 0x170   :  { %v840_v5 = vadd.f32 %v830_v13, %v747_v62 }
 0x172   :  { %v848_v6 = vadd.f32 %v1193_v3, %v840_v5 }
 0x174   :  { %v852_v8 = vsub.f32 0.0, %v848_v6 }
 0x176   :  { %v856_v11 = vmul.f32 1.442695, %v852_v8 }
 0x177   :  { %v686_v10 = vpop.f32.mrf.mxu3  ;;  %v832_v15 = vpop.f32.mrf.mxu1 }
 0x178   :  { %1210 = vpow2.f32 %v856_v11  ;;  %v751_v12 = vpop.f32.mrf.mxu2  ;;  %v841_v14 = vadd.f32 %v832_v15, %v749_v9 }
 0x179   :  { %v752_v19 = vadd.f32 %v751_v12, %v684_v4 }
 0x17a   :  { %v849_v16 = vadd.f32 %v1193_v3, %v841_v14 }
 0x17c   :  { %v853_v17 = vsub.f32 0.0, %v849_v16 }
 0x17e   :  { %v1211_v18 = vpop.eup %1210  ;;  %v858_v21 = vmul.f32 1.442695, %v853_v17 }
 0x17f   :  { %v864_v20 = vadd.f32 1.0, %v1211_v18  ;;  %v835_v22 = vpop.f32.mrf.mxu3 }
 0x180   :  { %v842_v23 = vadd.f32 %v835_v22, %v752_v19  ;;  %v753_v26 = vpop.f32.mrf.mxu2 }
 0x181   :  { %1212 = vrcp.f32 %v864_v20  ;;  %v754_v29 = vadd.f32 %v753_v26, %v686_v10 }
 0x182   :  { %1214 = vpow2.f32 %v858_v21  ;;  %v850_v24 = vadd.f32 %v1193_v3, %v842_v23 }
 0x184   :  { %v854_v27 = vsub.f32 0.0, %v850_v24 }
 0x186   :  { %v860_v30 = vmul.f32 1.442695, %v854_v27 }
 0x187   :  { %v1213_v31 = vpop.eup %1212  ;;  %v837_v32 = vpop.f32.mrf.mxu3 }
 0x188   :  { %v1215_v33 = vpop.eup %1214  ;;  %v872_v34 = vmul.f32 %v1213_v31, %v848_v6  ;;  %1216 = vpow2.f32 %v860_v30  ;;  %v843_v35 = vadd.f32 %v837_v32, %v754_v29 }
 0x189   :  { %v865_v36 = vadd.f32 1.0, %v1215_v33 }
 0x18a   :  { %v880_v37 = vadd.f32 %v876_v28, %v872_v34  ;;  %v851_v38 = vadd.f32 %v1193_v3, %v843_v35 }
 0x18b   :  { %1218 = vrcp.f32 %v865_v36 }
 0x18c   :  { %884 = vst [vmem:[#allocation8] sm:$0xff] %v880_v37  ;;  %v855_v39 = vsub.f32 0.0, %v851_v38 }
 0x18e   :  { %v1217_v40 = vpop.eup %1216  ;;  %v862_v41 = vmul.f32 1.442695, %v855_v39 }
 0x18f   :  { %v866_v42 = vadd.f32 1.0, %v1217_v40 }
 0x190   :  { %1220 = vpow2.f32 %v862_v41 }
 0x191   :  { %v1219_v44 = vpop.eup %1218  ;;  %1222 = vrcp.f32 %v866_v42 }
 0x192   :  { %v873_v45 = vmul.f32 %v1219_v44, %v849_v16 }
 0x194   :  { %v881_v47 = vadd.f32 %v877_v43, %v873_v45 }
 0x196   :  { %v1221_v48 = vpop.eup %1220  ;;  %885 = vst [vmem:[#allocation8 + $0x8] sm:$0xff] %v881_v47 }
 0x197   :  { %v1223_v50 = vpop.eup %1222  ;;  %v867_v51 = vadd.f32 1.0, %v1221_v48 }
 0x198   :  { %v874_v52 = vmul.f32 %v1223_v50, %v850_v24 }
 0x199   :  { %1224 = vrcp.f32 %v867_v51 }
 0x19a   :  { %v882_v54 = vadd.f32 %v878_v49, %v874_v52 }
 0x19c   :  { %886 = vst [vmem:[#allocation8 + $0x10] sm:$0xff] %v882_v54 }
 0x19f   :  { %v1225_v53 = vpop.eup %1224 }
 0x1a0   :  { %v875_v56 = vmul.f32 %v1225_v53, %v851_v38 }
 0x1a2   :  { %v883_v60 = vadd.f32 %v879_v55, %v875_v56 }
 0x1a4   :  { %887 = vst [vmem:[#allocation8 + $0x18] sm:$0xff] %v883_v60 }
 0x1a5   :  { %900 = dma.vmem_to_hbm [thread:$0]  %s893_s10, 512, %s895_s13, [#allocation4], %s1336_s14, %s1336_s14, %s1337_s15  }
 0x1a6   :  { %1326 = dma.done.wait [#allocation4], 512  }
 0x1a7   :  { %1327 = vsyncadd [#allocation4], 4294966784 }
 0x1a8   :  { %905 = vsyncpa [#allocation3], 1 }
 0x1a9   :  { %906 = vsyncpa [#allocation6], 1 }
 0x1aa   :  { %907 = vsyncpa [#allocation4], 1 }

</bundles_post_ra>
